<compile_context>
chip_gen: v5e
topology: v5e:2x2
jax: 0.10.0
libtpu: 0.0.40
codegen_flags: <defaults>
</compile_context>

<pallas_src>
import functools

import jax
import jax.numpy as jnp
from jax import lax
from jax.experimental import pallas as pl
from jax.experimental.pallas import tpu as pltpu

EPS = 1e-5


def conv_block_kernel(x_ref, w1_ref, w2_ref, dwc_ref,
                      g1_ref, b1_ref, g2_ref, b2_ref, g3_ref, b3_ref,
                      out_ref, *, batch, height, width):
    P = height * width
    L = batch * P
    cin = w1_ref.shape[1]
    cmid = w1_ref.shape[0]
    cout = w2_ref.shape[0]
    inv_count = 1.0 / float(L)

    def bn(h, g, b, relu6):
        # Training-mode BN: per-channel (row) stats over all N*H*W lanes.
        # Single-pass E[x^2]-E[x]^2 kept in f32 (switch to two-pass if any
        # operand is ever lowered to bf16).
        s1 = jnp.sum(h, axis=1, keepdims=True)
        s2 = jnp.sum(h * h, axis=1, keepdims=True)
        mean = s1 * inv_count
        var = s2 * inv_count - mean * mean            # biased variance
        inv = lax.rsqrt(var + EPS)
        y = (h - mean) * (inv * g) + b
        if relu6:
            y = jnp.clip(y, 0.0, 6.0)
        return y

    # ---- regroup (N*Cin, P) -> (Cin, N*P): batch moves onto the lane axis ----
    if batch == 1:
        x2 = x_ref[...]
    else:
        x2 = jnp.concatenate(
            [x_ref[n * cin:(n + 1) * cin, :] for n in range(batch)], axis=1)

    # ---- stage 1: 1x1 conv as a plain matmul (channels on sublanes) ----
    h1 = jnp.dot(w1_ref[...], x2, preferred_element_type=jnp.float32)   # (Cmid, L)
    a1 = bn(h1, g1_ref[...], b1_ref[...], relu6=True)

    # ---- stage 2: depthwise 3x3, stride 1, pad 1 ----
    # Flattened index l = n*P + h*W + w sits on lanes, so tap (dh, dw) is one
    # lane roll by delta = dh*W + dw plus an edge mask.  In-bounds positions
    # never cross a sample boundary (the masks zero every wrapped lane).
    idx = lax.broadcasted_iota(jnp.int32, (1, L), 1)
    if width & (width - 1) == 0:
        w_idx = jnp.bitwise_and(idx, width - 1)
    else:
        w_idx = idx % width  # TODO(synk): non-power-of-two W relies on s32 remainder lowering
    if P & (P - 1) == 0:
        p_idx = jnp.bitwise_and(idx, P - 1)
    else:
        p_idx = idx % P
    m_top = (p_idx >= width).astype(jnp.float32)                 # h >= 1
    m_bot = (p_idx < (height - 1) * width).astype(jnp.float32)   # h <= H-2
    m_left = (w_idx >= 1).astype(jnp.float32)                    # w >= 1
    m_right = (w_idx <= width - 2).astype(jnp.float32)           # w <= W-2
    row_mask = {-1: m_top, 0: None, 1: m_bot}
    col_mask = {-1: m_left, 0: None, 1: m_right}

    dwc = dwc_ref[...]                                           # (Cmid, 9)
    acc = a1 * dwc[:, 4:5]                                       # centre tap (kh = kw = 1)
    for kh in range(3):
        for kw in range(3):
            if kh == 1 and kw == 1:
                continue
            dh, dw = kh - 1, kw - 1
            delta = dh * width + dw
            # pltpu.roll follows jnp.roll semantics (result[l] = x[(l - shift) % L]);
            # we need result[l] = a1[l + delta], hence shift = (-delta) % L.
            v = pltpu.roll(a1, (-delta) % L, axis=1)
            rm, cm = row_mask[dh], col_mask[dw]
            mask = rm if cm is None else (cm if rm is None else rm * cm)
            acc = acc + v * (mask * dwc[:, kh * 3 + kw:kh * 3 + kw + 1])
    a2 = bn(acc, g2_ref[...], b2_ref[...], relu6=True)

    # ---- stage 3: 1x1 conv + BN (no activation) ----
    h3 = jnp.dot(w2_ref[...], a2, preferred_element_type=jnp.float32)   # (Cout, L)
    y = bn(h3, g3_ref[...], b3_ref[...], relu6=False)

    # ---- split lanes back per sample -> (N*Cout, P); NCHW reshape is free outside ----
    if batch == 1:
        out_ref[...] = y
    else:
        for n in range(batch):
            out_ref[n * cout:(n + 1) * cout, :] = y[:, n * P:(n + 1) * P]


@jax.jit
def conv_block(x_nchw, params):
    """x_nchw: (N, Cin, H, W) float32. Returns (N, Cout, H, W) float32."""
    w1, dwk, w2, g1, b1, g2, b2, g3, b3 = params
    N, Cin, H, W = x_nchw.shape
    Cmid = w1.shape[0]
    Cout = w2.shape[0]
    P = H * W
    f32 = jnp.float32

    # Only free reshapes here: no kron / tile / stack parameter prep.
    x2 = x_nchw.reshape(N * Cin, P).astype(f32)
    dwc = dwk.reshape(Cmid, 9).astype(f32)       # row c = taps of channel c (kh-major)

    def col(v):
        return v.astype(f32).reshape(-1, 1)

    kernel = functools.partial(conv_block_kernel, batch=N, height=H, width=W)

    flops = (2 * (N * P) * (Cin * Cmid + 9 * Cmid + Cmid * Cout)
             + 10 * (N * P) * (2 * Cmid + Cout))
    bytes_accessed = 4 * (N * Cin * P + Cmid * Cin + Cout * Cmid + 9 * Cmid
                          + 4 * Cmid + 2 * Cout + N * Cout * P)

    # Single block, no grid: BN stats are global over (N, H, W) and the whole
    # working set is a few tens of KiB; VMEM budget declared explicitly.
    out2 = pl.pallas_call(
        kernel,
        out_shape=jax.ShapeDtypeStruct((N * Cout, P), f32),
        compiler_params=pltpu.CompilerParams(vmem_limit_bytes=32 * 1024 * 1024),
        cost_estimate=pl.CostEstimate(
            flops=int(flops),
            transcendentals=int(2 * Cmid + Cout),
            bytes_accessed=int(bytes_accessed)),
    )(x2, w1.astype(f32), w2.astype(f32), dwc,
      col(g1), col(b1), col(g2), col(b2), col(g3), col(b3))

    return out2.reshape(N, Cout, H, W)            # free reshape back to NCHW


def make_params(key, in_c, out_c, expension=2):
    mid_c = in_c * expension
    ks = jax.random.split(key, 9)
    # Weights kept in their PyTorch orientations (squeezed conv weights).
    w1 = jax.random.normal(ks[0], (mid_c, in_c), jnp.float32) * 0.1    # conv1.weight[:, :, 0, 0]
    dwk = jax.random.normal(ks[1], (mid_c, 3, 3), jnp.float32) * 0.1   # dwconv.weight[:, 0]
    w2 = jax.random.normal(ks[2], (out_c, mid_c), jnp.float32) * 0.1   # conv2.weight[:, :, 0, 0]
    g1 = 1.0 + 0.1 * jax.random.normal(ks[3], (mid_c,), jnp.float32)
    b1 = 0.1 * jax.random.normal(ks[4], (mid_c,), jnp.float32)
    g2 = 1.0 + 0.1 * jax.random.normal(ks[5], (mid_c,), jnp.float32)
    b2 = 0.1 * jax.random.normal(ks[6], (mid_c,), jnp.float32)
    g3 = 1.0 + 0.1 * jax.random.normal(ks[7], (out_c,), jnp.float32)
    b3 = 0.1 * jax.random.normal(ks[8], (out_c,), jnp.float32)
    return (w1, dwk, w2, g1, b1, g2, b2, g3, b3)


def reference(x_nchw, params):
    """Pure-JAX reference (independent of the kernel's formulation)."""
    w1, dwk, w2, g1, b1, g2, b2, g3, b3 = params
    x = jnp.transpose(x_nchw, (0, 2, 3, 1)).astype(jnp.float32)   # NHWC

    def bn(h, g, b):
        m = jnp.mean(h, axis=(0, 1, 2), keepdims=True)
        v = jnp.mean((h - m) ** 2, axis=(0, 1, 2), keepdims=True)
        return (h - m) / jnp.sqrt(v + EPS) * g.reshape(1, 1, 1, -1) + b.reshape(1, 1, 1, -1)

    h1 = jnp.einsum('nhwi,oi->nhwo', x, w1)
    a1 = jnp.clip(bn(h1, g1, b1), 0.0, 6.0)

    cmid = a1.shape[-1]
    dwk_hwio = jnp.transpose(dwk, (1, 2, 0)).reshape(3, 3, 1, cmid)
    h2 = lax.conv_general_dilated(
        a1, dwk_hwio, window_strides=(1, 1), padding='SAME',
        dimension_numbers=('NHWC', 'HWIO', 'NHWC'), feature_group_count=cmid)
    a2 = jnp.clip(bn(h2, g2, b2), 0.0, 6.0)

    h3 = jnp.einsum('nhwi,oi->nhwo', a2, w2)
    y = bn(h3, g3, b3)
    return jnp.transpose(y, (0, 3, 1, 2))


if __name__ == "__main__":
    key = jax.random.PRNGKey(0)
    kx, kp = jax.random.split(key)

    N, in_c, H, W = 2, 4, 16, 16
    out_c, expension = 8, 2

    x = jax.random.normal(kx, (N, in_c, H, W), jnp.float32)
    params = make_params(kp, in_c, out_c, expension)

    out = jax.block_until_ready(conv_block(x, params))

    ref = reference(x, params)
    assert out.shape == (N, out_c, H, W)
    assert jnp.allclose(out, ref, rtol=1e-4, atol=1e-4), "mismatch vs reference"

    print("KERNEL_OK")
</pallas_src>

<mosaic_0001>
module attributes {stable_mosaic.version = 11 : i64} {
  func.func @conv_block_kernel(%arg0: memref<8x256xf32, #tpu.memory_space<vmem>>, %arg1: memref<8x4xf32, #tpu.memory_space<vmem>>, %arg2: memref<8x8xf32, #tpu.memory_space<vmem>>, %arg3: memref<8x9xf32, #tpu.memory_space<vmem>>, %arg4: memref<8x1xf32, #tpu.memory_space<vmem>>, %arg5: memref<8x1xf32, #tpu.memory_space<vmem>>, %arg6: memref<8x1xf32, #tpu.memory_space<vmem>>, %arg7: memref<8x1xf32, #tpu.memory_space<vmem>>, %arg8: memref<8x1xf32, #tpu.memory_space<vmem>>, %arg9: memref<8x1xf32, #tpu.memory_space<vmem>>, %arg10: memref<16x256xf32, #tpu.memory_space<vmem>>) attributes {dimension_semantics = [], scalar_prefetch = 0 : i64, scratch_operands = 0 : i64, tpu.core_type = #tpu.core_type<tc>} {
    %c0 = arith.constant 0 : index
    %c0_0 = arith.constant 0 : index
    %0 = vector.load %arg0[%c0, %c0_0] : memref<8x256xf32, #tpu.memory_space<vmem>>, vector<4x256xf32>
    %c4 = arith.constant 4 : index
    %c0_1 = arith.constant 0 : index
    %1 = vector.load %arg0[%c4, %c0_1] : memref<8x256xf32, #tpu.memory_space<vmem>>, vector<4x256xf32>
    %2 = tpu.concatenate %0, %1 in 1 : vector<4x256xf32>, vector<4x256xf32> -> vector<4x512xf32>
    %c0_2 = arith.constant 0 : index
    %c0_3 = arith.constant 0 : index
    %3 = vector.load %arg1[%c0_2, %c0_3] : memref<8x4xf32, #tpu.memory_space<vmem>>, vector<8x4xf32>
    %cst = arith.constant dense<0.000000e+00> : vector<8x512xf32>
    %4 = tpu.matmul %3, %2, %cst {dimension_numbers = #tpu.dot_dimension_numbers<[1], [0], [0], [1], [0, 0, 1, 1], [], []>} : vector<8x4xf32>, vector<4x512xf32>, vector<8x512xf32> -> vector<8x512xf32>
    %c0_4 = arith.constant 0 : index
    %c0_5 = arith.constant 0 : index
    %5 = vector.load %arg4[%c0_4, %c0_5] : memref<8x1xf32, #tpu.memory_space<vmem>>, vector<8x1xf32>
    %c0_6 = arith.constant 0 : index
    %c0_7 = arith.constant 0 : index
    %6 = vector.load %arg5[%c0_6, %c0_7] : memref<8x1xf32, #tpu.memory_space<vmem>>, vector<8x1xf32>
    %cst_8 = arith.constant dense<0.000000e+00> : vector<8xf32>
    %7 = vector.multi_reduction <add>, %4, %cst_8 [1] : vector<8x512xf32> to vector<8xf32>
    %8 = vector.shape_cast %7 : vector<8xf32> to vector<8x1xf32>
    %9 = arith.mulf %4, %4 : vector<8x512xf32>
    %cst_9 = arith.constant dense<0.000000e+00> : vector<8xf32>
    %10 = vector.multi_reduction <add>, %9, %cst_9 [1] : vector<8x512xf32> to vector<8xf32>
    %11 = vector.shape_cast %10 : vector<8xf32> to vector<8x1xf32>
    %cst_10 = arith.constant 0.001953125 : f32
    %12 = vector.broadcast %cst_10 : f32 to vector<8x1xf32>
    %13 = arith.mulf %8, %12 : vector<8x1xf32>
    %cst_11 = arith.constant 0.001953125 : f32
    %14 = vector.broadcast %cst_11 : f32 to vector<8x1xf32>
    %15 = arith.mulf %11, %14 : vector<8x1xf32>
    %16 = arith.mulf %13, %13 : vector<8x1xf32>
    %17 = arith.subf %15, %16 : vector<8x1xf32>
    %cst_12 = arith.constant 9.99999974E-6 : f32
    %18 = vector.broadcast %cst_12 : f32 to vector<8x1xf32>
    %19 = arith.addf %17, %18 : vector<8x1xf32>
    %20 = math.rsqrt %19 : vector<8x1xf32>
    %21 = vector.broadcast %13 : vector<8x1xf32> to vector<8x512xf32>
    %22 = arith.subf %4, %21 : vector<8x512xf32>
    %23 = arith.mulf %20, %5 : vector<8x1xf32>
    %24 = vector.broadcast %23 : vector<8x1xf32> to vector<8x512xf32>
    %25 = arith.mulf %22, %24 : vector<8x512xf32>
    %26 = vector.broadcast %6 : vector<8x1xf32> to vector<8x512xf32>
    %27 = arith.addf %25, %26 : vector<8x512xf32>
    %cst_13 = arith.constant 0.000000e+00 : f32
    %cst_14 = arith.constant 6.000000e+00 : f32
    %28 = vector.broadcast %cst_13 : f32 to vector<8x512xf32>
    %29 = arith.maximumf %28, %27 : vector<8x512xf32>
    %30 = vector.broadcast %cst_14 : f32 to vector<8x512xf32>
    %31 = arith.minimumf %30, %29 : vector<8x512xf32>
    %32 = tpu.iota {dimensions = array<i32: 1>} : vector<1x512xi32>
    %c15_i32 = arith.constant 15 : i32
    %33 = vector.broadcast %c15_i32 : i32 to vector<1x512xi32>
    %34 = arith.andi %32, %33 : vector<1x512xi32>
    %c255_i32 = arith.constant 255 : i32
    %35 = vector.broadcast %c255_i32 : i32 to vector<1x512xi32>
    %36 = arith.andi %32, %35 : vector<1x512xi32>
    %c16_i32 = arith.constant 16 : i32
    %37 = vector.broadcast %c16_i32 : i32 to vector<1x512xi32>
    %38 = arith.cmpi sge, %36, %37 : vector<1x512xi32>
    %39 = arith.extui %38 : vector<1x512xi1> to vector<1x512xi32>
    %40 = arith.sitofp %39 : vector<1x512xi32> to vector<1x512xf32>
    %c240_i32 = arith.constant 240 : i32
    %41 = vector.broadcast %c240_i32 : i32 to vector<1x512xi32>
    %42 = arith.cmpi slt, %36, %41 : vector<1x512xi32>
    %43 = arith.extui %42 : vector<1x512xi1> to vector<1x512xi32>
    %44 = arith.sitofp %43 : vector<1x512xi32> to vector<1x512xf32>
    %c1_i32 = arith.constant 1 : i32
    %45 = vector.broadcast %c1_i32 : i32 to vector<1x512xi32>
    %46 = arith.cmpi sge, %34, %45 : vector<1x512xi32>
    %47 = arith.extui %46 : vector<1x512xi1> to vector<1x512xi32>
    %48 = arith.sitofp %47 : vector<1x512xi32> to vector<1x512xf32>
    %c14_i32 = arith.constant 14 : i32
    %49 = vector.broadcast %c14_i32 : i32 to vector<1x512xi32>
    %50 = arith.cmpi sle, %34, %49 : vector<1x512xi32>
    %51 = arith.extui %50 : vector<1x512xi1> to vector<1x512xi32>
    %52 = arith.sitofp %51 : vector<1x512xi32> to vector<1x512xf32>
    %c0_15 = arith.constant 0 : index
    %c0_16 = arith.constant 0 : index
    %53 = vector.load %arg3[%c0_15, %c0_16] : memref<8x9xf32, #tpu.memory_space<vmem>>, vector<8x9xf32>
    %54 = vector.extract_strided_slice %53 {offsets = [0, 4], sizes = [8, 1], strides = [1, 1]} : vector<8x9xf32> to vector<8x1xf32>
    %55 = vector.broadcast %54 : vector<8x1xf32> to vector<8x512xf32>
    %56 = arith.mulf %31, %55 : vector<8x512xf32>
    %c17_i32 = arith.constant 17 : i32
    %57 = tpu.dynamic_rotate %31 by %c17_i32 dim 1 : vector<8x512xf32>, i32 -> vector<8x512xf32>
    %58 = arith.mulf %40, %48 : vector<1x512xf32>
    %59 = vector.extract_strided_slice %53 {offsets = [0, 0], sizes = [8, 1], strides = [1, 1]} : vector<8x9xf32> to vector<8x1xf32>
    %60 = vector.broadcast %58 : vector<1x512xf32> to vector<8x512xf32>
    %61 = vector.broadcast %59 : vector<8x1xf32> to vector<8x512xf32>
    %62 = arith.mulf %60, %61 : vector<8x512xf32>
    %63 = arith.mulf %57, %62 : vector<8x512xf32>
    %64 = arith.addf %56, %63 : vector<8x512xf32>
    %c16_i32_17 = arith.constant 16 : i32
    %65 = tpu.dynamic_rotate %31 by %c16_i32_17 dim 1 : vector<8x512xf32>, i32 -> vector<8x512xf32>
    %66 = vector.extract_strided_slice %53 {offsets = [0, 1], sizes = [8, 1], strides = [1, 1]} : vector<8x9xf32> to vector<8x1xf32>
    %67 = vector.broadcast %40 : vector<1x512xf32> to vector<8x512xf32>
    %68 = vector.broadcast %66 : vector<8x1xf32> to vector<8x512xf32>
    %69 = arith.mulf %67, %68 : vector<8x512xf32>
    %70 = arith.mulf %65, %69 : vector<8x512xf32>
    %71 = arith.addf %64, %70 : vector<8x512xf32>
    %c15_i32_18 = arith.constant 15 : i32
    %72 = tpu.dynamic_rotate %31 by %c15_i32_18 dim 1 : vector<8x512xf32>, i32 -> vector<8x512xf32>
    %73 = arith.mulf %40, %52 : vector<1x512xf32>
    %74 = vector.extract_strided_slice %53 {offsets = [0, 2], sizes = [8, 1], strides = [1, 1]} : vector<8x9xf32> to vector<8x1xf32>
    %75 = vector.broadcast %73 : vector<1x512xf32> to vector<8x512xf32>
    %76 = vector.broadcast %74 : vector<8x1xf32> to vector<8x512xf32>
    %77 = arith.mulf %75, %76 : vector<8x512xf32>
    %78 = arith.mulf %72, %77 : vector<8x512xf32>
    %79 = arith.addf %71, %78 : vector<8x512xf32>
    %c1_i32_19 = arith.constant 1 : i32
    %80 = tpu.dynamic_rotate %31 by %c1_i32_19 dim 1 : vector<8x512xf32>, i32 -> vector<8x512xf32>
    %81 = vector.extract_strided_slice %53 {offsets = [0, 3], sizes = [8, 1], strides = [1, 1]} : vector<8x9xf32> to vector<8x1xf32>
    %82 = vector.broadcast %48 : vector<1x512xf32> to vector<8x512xf32>
    %83 = vector.broadcast %81 : vector<8x1xf32> to vector<8x512xf32>
    %84 = arith.mulf %82, %83 : vector<8x512xf32>
    %85 = arith.mulf %80, %84 : vector<8x512xf32>
    %86 = arith.addf %79, %85 : vector<8x512xf32>
    %c511_i32 = arith.constant 511 : i32
    %87 = tpu.dynamic_rotate %31 by %c511_i32 dim 1 : vector<8x512xf32>, i32 -> vector<8x512xf32>
    %88 = vector.extract_strided_slice %53 {offsets = [0, 5], sizes = [8, 1], strides = [1, 1]} : vector<8x9xf32> to vector<8x1xf32>
    %89 = vector.broadcast %52 : vector<1x512xf32> to vector<8x512xf32>
    %90 = vector.broadcast %88 : vector<8x1xf32> to vector<8x512xf32>
    %91 = arith.mulf %89, %90 : vector<8x512xf32>
    %92 = arith.mulf %87, %91 : vector<8x512xf32>
    %93 = arith.addf %86, %92 : vector<8x512xf32>
    %c497_i32 = arith.constant 497 : i32
    %94 = tpu.dynamic_rotate %31 by %c497_i32 dim 1 : vector<8x512xf32>, i32 -> vector<8x512xf32>
    %95 = arith.mulf %44, %48 : vector<1x512xf32>
    %96 = vector.extract_strided_slice %53 {offsets = [0, 6], sizes = [8, 1], strides = [1, 1]} : vector<8x9xf32> to vector<8x1xf32>
    %97 = vector.broadcast %95 : vector<1x512xf32> to vector<8x512xf32>
    %98 = vector.broadcast %96 : vector<8x1xf32> to vector<8x512xf32>
    %99 = arith.mulf %97, %98 : vector<8x512xf32>
    %100 = arith.mulf %94, %99 : vector<8x512xf32>
    %101 = arith.addf %93, %100 : vector<8x512xf32>
    %c496_i32 = arith.constant 496 : i32
    %102 = tpu.dynamic_rotate %31 by %c496_i32 dim 1 : vector<8x512xf32>, i32 -> vector<8x512xf32>
    %103 = vector.extract_strided_slice %53 {offsets = [0, 7], sizes = [8, 1], strides = [1, 1]} : vector<8x9xf32> to vector<8x1xf32>
    %104 = vector.broadcast %44 : vector<1x512xf32> to vector<8x512xf32>
    %105 = vector.broadcast %103 : vector<8x1xf32> to vector<8x512xf32>
    %106 = arith.mulf %104, %105 : vector<8x512xf32>
    %107 = arith.mulf %102, %106 : vector<8x512xf32>
    %108 = arith.addf %101, %107 : vector<8x512xf32>
    %c495_i32 = arith.constant 495 : i32
    %109 = tpu.dynamic_rotate %31 by %c495_i32 dim 1 : vector<8x512xf32>, i32 -> vector<8x512xf32>
    %110 = arith.mulf %44, %52 : vector<1x512xf32>
    %111 = vector.extract_strided_slice %53 {offsets = [0, 8], sizes = [8, 1], strides = [1, 1]} : vector<8x9xf32> to vector<8x1xf32>
    %112 = vector.broadcast %110 : vector<1x512xf32> to vector<8x512xf32>
    %113 = vector.broadcast %111 : vector<8x1xf32> to vector<8x512xf32>
    %114 = arith.mulf %112, %113 : vector<8x512xf32>
    %115 = arith.mulf %109, %114 : vector<8x512xf32>
    %116 = arith.addf %108, %115 : vector<8x512xf32>
    %c0_20 = arith.constant 0 : index
    %c0_21 = arith.constant 0 : index
    %117 = vector.load %arg6[%c0_20, %c0_21] : memref<8x1xf32, #tpu.memory_space<vmem>>, vector<8x1xf32>
    %c0_22 = arith.constant 0 : index
    %c0_23 = arith.constant 0 : index
    %118 = vector.load %arg7[%c0_22, %c0_23] : memref<8x1xf32, #tpu.memory_space<vmem>>, vector<8x1xf32>
    %cst_24 = arith.constant dense<0.000000e+00> : vector<8xf32>
    %119 = vector.multi_reduction <add>, %116, %cst_24 [1] : vector<8x512xf32> to vector<8xf32>
    %120 = vector.shape_cast %119 : vector<8xf32> to vector<8x1xf32>
    %121 = arith.mulf %116, %116 : vector<8x512xf32>
    %cst_25 = arith.constant dense<0.000000e+00> : vector<8xf32>
    %122 = vector.multi_reduction <add>, %121, %cst_25 [1] : vector<8x512xf32> to vector<8xf32>
    %123 = vector.shape_cast %122 : vector<8xf32> to vector<8x1xf32>
    %cst_26 = arith.constant 0.001953125 : f32
    %124 = vector.broadcast %cst_26 : f32 to vector<8x1xf32>
    %125 = arith.mulf %120, %124 : vector<8x1xf32>
    %cst_27 = arith.constant 0.001953125 : f32
    %126 = vector.broadcast %cst_27 : f32 to vector<8x1xf32>
    %127 = arith.mulf %123, %126 : vector<8x1xf32>
    %128 = arith.mulf %125, %125 : vector<8x1xf32>
    %129 = arith.subf %127, %128 : vector<8x1xf32>
    %cst_28 = arith.constant 9.99999974E-6 : f32
    %130 = vector.broadcast %cst_28 : f32 to vector<8x1xf32>
    %131 = arith.addf %129, %130 : vector<8x1xf32>
    %132 = math.rsqrt %131 : vector<8x1xf32>
    %133 = vector.broadcast %125 : vector<8x1xf32> to vector<8x512xf32>
    %134 = arith.subf %116, %133 : vector<8x512xf32>
    %135 = arith.mulf %132, %117 : vector<8x1xf32>
    %136 = vector.broadcast %135 : vector<8x1xf32> to vector<8x512xf32>
    %137 = arith.mulf %134, %136 : vector<8x512xf32>
    %138 = vector.broadcast %118 : vector<8x1xf32> to vector<8x512xf32>
    %139 = arith.addf %137, %138 : vector<8x512xf32>
    %cst_29 = arith.constant 0.000000e+00 : f32
    %cst_30 = arith.constant 6.000000e+00 : f32
    %140 = vector.broadcast %cst_29 : f32 to vector<8x512xf32>
    %141 = arith.maximumf %140, %139 : vector<8x512xf32>
    %142 = vector.broadcast %cst_30 : f32 to vector<8x512xf32>
    %143 = arith.minimumf %142, %141 : vector<8x512xf32>
    %c0_31 = arith.constant 0 : index
    %c0_32 = arith.constant 0 : index
    %144 = vector.load %arg2[%c0_31, %c0_32] : memref<8x8xf32, #tpu.memory_space<vmem>>, vector<8x8xf32>
    %cst_33 = arith.constant dense<0.000000e+00> : vector<8x512xf32>
    %145 = tpu.matmul %144, %143, %cst_33 {dimension_numbers = #tpu.dot_dimension_numbers<[1], [0], [0], [1], [0, 0, 1, 1], [], []>} : vector<8x8xf32>, vector<8x512xf32>, vector<8x512xf32> -> vector<8x512xf32>
    %c0_34 = arith.constant 0 : index
    %c0_35 = arith.constant 0 : index
    %146 = vector.load %arg8[%c0_34, %c0_35] : memref<8x1xf32, #tpu.memory_space<vmem>>, vector<8x1xf32>
    %c0_36 = arith.constant 0 : index
    %c0_37 = arith.constant 0 : index
    %147 = vector.load %arg9[%c0_36, %c0_37] : memref<8x1xf32, #tpu.memory_space<vmem>>, vector<8x1xf32>
    %cst_38 = arith.constant dense<0.000000e+00> : vector<8xf32>
    %148 = vector.multi_reduction <add>, %145, %cst_38 [1] : vector<8x512xf32> to vector<8xf32>
    %149 = vector.shape_cast %148 : vector<8xf32> to vector<8x1xf32>
    %150 = arith.mulf %145, %145 : vector<8x512xf32>
    %cst_39 = arith.constant dense<0.000000e+00> : vector<8xf32>
    %151 = vector.multi_reduction <add>, %150, %cst_39 [1] : vector<8x512xf32> to vector<8xf32>
    %152 = vector.shape_cast %151 : vector<8xf32> to vector<8x1xf32>
    %cst_40 = arith.constant 0.001953125 : f32
    %153 = vector.broadcast %cst_40 : f32 to vector<8x1xf32>
    %154 = arith.mulf %149, %153 : vector<8x1xf32>
    %cst_41 = arith.constant 0.001953125 : f32
    %155 = vector.broadcast %cst_41 : f32 to vector<8x1xf32>
    %156 = arith.mulf %152, %155 : vector<8x1xf32>
    %157 = arith.mulf %154, %154 : vector<8x1xf32>
    %158 = arith.subf %156, %157 : vector<8x1xf32>
    %cst_42 = arith.constant 9.99999974E-6 : f32
    %159 = vector.broadcast %cst_42 : f32 to vector<8x1xf32>
    %160 = arith.addf %158, %159 : vector<8x1xf32>
    %161 = math.rsqrt %160 : vector<8x1xf32>
    %162 = vector.broadcast %154 : vector<8x1xf32> to vector<8x512xf32>
    %163 = arith.subf %145, %162 : vector<8x512xf32>
    %164 = arith.mulf %161, %146 : vector<8x1xf32>
    %165 = vector.broadcast %164 : vector<8x1xf32> to vector<8x512xf32>
    %166 = arith.mulf %163, %165 : vector<8x512xf32>
    %167 = vector.broadcast %147 : vector<8x1xf32> to vector<8x512xf32>
    %168 = arith.addf %166, %167 : vector<8x512xf32>
    %169 = vector.extract_strided_slice %168 {offsets = [0, 0], sizes = [8, 256], strides = [1, 1]} : vector<8x512xf32> to vector<8x256xf32>
    %c0_43 = arith.constant 0 : index
    %c0_44 = arith.constant 0 : index
    %170 = vector.load %arg10[%c0_43, %c0_44] : memref<16x256xf32, #tpu.memory_space<vmem>>, vector<8x256xf32>
    tpu.vector_store %arg10[%c0_43, %c0_44], %169 {strides = array<i32>} : memref<16x256xf32, #tpu.memory_space<vmem>>, vector<8x256xf32>,
    %171 = vector.extract_strided_slice %168 {offsets = [0, 256], sizes = [8, 256], strides = [1, 1]} : vector<8x512xf32> to vector<8x256xf32>
    %c8 = arith.constant 8 : index
    %c0_45 = arith.constant 0 : index
    %172 = vector.load %arg10[%c8, %c0_45] : memref<16x256xf32, #tpu.memory_space<vmem>>, vector<8x256xf32>
    tpu.vector_store %arg10[%c8, %c0_45], %171 {strides = array<i32>} : memref<16x256xf32, #tpu.memory_space<vmem>>, vector<8x256xf32>,
    return
  }
}

</mosaic_0001>

<bundles_post_ra>
// kernel: conv_block.1
= control target key start
LH: loop header
LB: loop body
LE: loop exit
PB: predicated region body
PF: predicated region fallthrough
CT: control target
= control target key end

     0   :  { %vm48_vm0 = vcmask 1043456   ;;  %vm44_vm1 = vcmask 31744   ;;  %v790_v3 = vmov 3   ;;  %v791_v24 = vmov 0   ;;  %s800_s25 = smov 16   ;;  %s801_s26 = smov 15   ;;  %s1224_s0 = inlined_call_operand.vmem [shape: f32[8,256], index: 0, kind: input, shape index: {}]   ;;  %s1225_s1 = inlined_call_operand.vmem [shape: f32[8,4], index: 1, kind: input, shape index: {}]   ;;  %s1226_s3 = inlined_call_operand.vmem [shape: f32[8,9], index: 3, kind: input, shape index: {}]   ;;  %s1227_s5 = inlined_call_operand.vmem [shape: f32[8,1], index: 5, kind: input, shape index: {}]   ;;  %s1228_s4 = inlined_call_operand.vmem [shape: f32[8,1], index: 4, kind: input, shape index: {}]   ;;  %s1229_s6 = inlined_call_operand.vmem [shape: f32[8,1], index: 6, kind: input, shape index: {}]   ;;  %s1230_s7 = inlined_call_operand.vmem [shape: f32[8,1], index: 7, kind: input, shape index: {}]   ;;  %s1231_s2 = inlined_call_operand.vmem [shape: f32[8,8], index: 2, kind: input, shape index: {}]   ;;  %s1232_s9 = inlined_call_operand.vmem [shape: f32[8,1], index: 9, kind: input, shape index: {}]   ;;  %s1233_s8 = inlined_call_operand.vmem [shape: f32[8,1], index: 8, kind: input, shape index: {}]   ;;  %s1234_s10 = inlined_call_operand.vmem [shape: f32[16,256], index: 10, kind: output, shape index: {}]  }
   0x1   :  { %v37_v0 = vld [vmem:[%s1224_s0] sm:$0xf0]  ;;  %v38_v2 = vld [vmem:[%s1224_s0 + $0x8] sm:$0xf0]  ;;  %776 = vset.pattern.permute.xlu0 %v790_v3  ;;  %v35_v6 = vld [vmem:[%s1224_s0] sm:$0xf]  ;;  %771 = vset.pattern.permute.xlu1 %v791_v24 }
   0x2   :  { %v43_v1 = vld [vmem:[%s1225_s1] sm:$0xff]  ;;  %v41_v4 = vrot.slane %v37_v0, 4  ;;  %v42_v5 = vrot.slane %v38_v2, 4  ;;  %v36_v7 = vld [vmem:[%s1224_s0 + $0x8] sm:$0xf]  ;;  %729 = vmatpush.msk.msra.mxu0 %vm48_vm0, %v35_v6  ;;  %772 = vset.pattern.permute.xlu2 %v791_v24  ;;  %v792_v25 = vmov 1  }
   0x3   :  { %731 = vmatpush.msk.msra.mxu1 %vm48_vm0, %v36_v7  ;;  %v885_v8 = vld [vmem:[%s1226_s3] sm:$0xff]  ;;  %730 = vmatmul.msk.f32.vlgmr.msra.gmra.mxu0 %vm44_vm1, %v43_v1  ;;  %v793_v27 = vmov 2   ;;  %v794_v29 = vmov 4   ;;  %v795_v45 = vmov 5   ;;  %v796_v46 = vmov 6   ;;  %s802_s27 = smov 1  }
   0x4   :  { %733 = vmatpush.msk.msra.mxu2 %vm48_vm0, %v41_v4  ;;  %735 = vmatpush.msk.msra.mxu3 %vm48_vm0, %v42_v5  ;;  %v140_v23 = vld [vmem:[%s1227_s5] sm:$0xff]  ;;  %v797_v47 = vmov 7   ;;  %v798_v51 = vmov 8   ;;  %s803_s28 = smov 111   ;;  %s804_s29 = smov 127  }
   0x5   :  { %734 = vmatmul.msk.f32.vlgmr.msra.gmra.mxu2 %vm44_vm1, %v43_v1  ;;  %736 = vmatmul.msk.f32.vlgmr.msra.gmra.mxu3 %vm44_vm1, %v43_v1  ;;  %v139_v41 = vld [vmem:[%s1228_s4] sm:$0xff]  ;;  %s799_s4 = smov 17   ;;  %s805_s30 = smov 113  }
   0x6   :  { %732 = vmatmul.msk.f32.vlgmr.msra.gmra.mxu1 %vm44_vm1, %v43_v1  ;;  %381 = vperm.xlu0 %776, %v885_v8   ;;  %s806_s11 = smov 112  }
   0x7   :  { %186 = vperm.xlu1 %771, %v140_v23   ;;  %290 = vperm.xlu2 %772, %v885_v8  }
   0xe   :  { %777 = vset.pattern.permute.xlu0 %v795_v45 }
   0xf   :  { %774 = vset.pattern.permute.xlu1 %v792_v25  ;;  %773 = vset.pattern.permute.xlu2 %v794_v29  ;;  %v807_v29 = vmov 0.0  }
  0x10   :  { %319 = vperm.xlu1 %774, %v885_v8   ;;  %265 = vperm.xlu2 %773, %v885_v8  }
  0x18   :  { %775 = vset.pattern.permute.xlu1 %v793_v27  ;;  %783 = vset.pattern.permute.xlu2 %v791_v24 }
  0x19   :  { %352 = vperm.xlu1 %775, %v885_v8  }
  0x21   :  { %780 = vset.pattern.permute.xlu1 %v791_v24 }
  0x78   :  { %v919_v26 = vpop.permute.xlu0 %381 }
  0x79   :  { %v187_v48 = vpop.permute.xlu1 %186 }
  0x80   :  { %v892_v9 = vpop.f32.mrf.mxu0 }
  0x81   :  { %v146_v12 = vmul.f32 %v892_v9, %v892_v9 }
  0x82   :  { %v931_v49 = vpop.permute.xlu1 %319 }
  0x83   :  { %v894_v10 = vpop.f32.mrf.mxu1 }
  0x84   :  { %v141_v11 = vadd.f32 %v894_v10, %v892_v9  ;;  %v147_v13 = vmul.f32 %v894_v10, %v894_v10 }
  0x86   :  { %v150_v19 = vadd.f32 %v147_v13, %v146_v12  ;;  %v201_v13 = vlaneseq }
  0x88   :  { %v902_v14 = vpop.f32.mrf.mxu2  ;;  %v904_v15 = vpop.f32.mrf.mxu3 }
  0x89   :  { %v142_v16 = vadd.f32 %v141_v11, %v902_v14  ;;  %v148_v17 = vmul.f32 %v902_v14, %v902_v14  ;;  %v149_v20 = vmul.f32 %v904_v15, %v904_v15 }
  0x8b   :  { %v143_v18 = vadd.f32 %v142_v16, %v904_v15  ;;  %v151_v21 = vadd.f32 %v150_v19, %v148_v17  ;;  %v933_v50 = vpop.permute.xlu1 %352 }
  0x8d   :  { %144 = vadd.xlane.f32.xlu0 %v143_v18  ;;  %v152_v22 = vadd.f32 %v151_v21, %v149_v20 }
  0x95   :  { %153 = vadd.xlane.f32.xlu0 %v152_v22 }
  0xa9   :  { %410 = vperm.xlu0 %777, %v885_v8  }
  0xb1   :  { %778 = vset.pattern.permute.xlu0 %v796_v46 }
  0xb2   :  { %443 = vperm.xlu0 %778, %v885_v8  }
  0xba   :  { %779 = vset.pattern.permute.xlu0 %v797_v47 }
  0xbb   :  { %472 = vperm.xlu0 %779, %v885_v8  }
  0xc3   :  { %781 = vset.pattern.permute.xlu0 %v798_v51 }
 0x100   :  { %v145_v28 = vpop.xlane.xlu0 %144 }
 0x101   :  { %v155_v30 = vmul.f32 0.001953125, %v145_v28 }
 0x103   :  { %v157_v32 = vmul.f32 %v155_v30, %v155_v30  ;;  %v170_v52 = vsub.f32 %v892_v9, %v155_v30  ;;  %v171_v53 = vsub.f32 %v894_v10, %v155_v30  ;;  %v173_v54 = vsub.f32 %v904_v15, %v155_v30 }
 0x104   :  { %v172_v59 = vsub.f32 %v902_v14, %v155_v30  ;;  %v984_v15 = vand.u32 127, %v201_v13 }
 0x106   :  { %v990_v17 = vadd.s32 256, %v984_v15  ;;  %v999_v21 = vadd.s32 128, %v984_v15  ;;  %v1002_v22 = vadd.s32 384, %v984_v15  ;;  %v206_v23 = vand.u32 15, %v984_v15 }
 0x107   :  { %v210_v25 = vand.u32 255, %v984_v15  ;;  %vm280_vm9 = vcmp.lt.s32.totalorder %v984_v15, 17  ;;  %vm313_vm10 = vcmp.lt.s32.totalorder %v984_v15, 16  ;;  %vm342_vm0 = vcmp.lt.s32.totalorder %v984_v15, 15 }
 0x108   :  { %v154_v31 = vpop.xlane.xlu0 %153  ;;  %v212_v18 = vand.u32 255, %v990_v17  ;;  %v208_v19 = vand.u32 15, %v990_v17  ;;  %v207_v27 = vand.u32 15, %v999_v21  ;;  %v209_v28 = vand.u32 15, %v1002_v22 }
 0x109   :  { %v156_v33 = vmul.f32 0.001953125, %v154_v31  ;;  %vm214_vm7 = vcmp.ge.s32.totalorder %v210_v25, 16  ;;  %vm238_vm8 = vcmp.ge.s32.totalorder %v206_v23, 1  ;;  %vm250_vm13 = vcmp.le.s32.totalorder %v206_v23, 14 }
 0x10a   :  { %vm216_vm5 = vcmp.ge.s32.totalorder %v212_v18, 16  ;;  %vm240_vm6 = vcmp.ge.s32.totalorder %v208_v19, 1  ;;  %vm239_vm11 = vcmp.ge.s32.totalorder %v207_v27, 1  ;;  %vm1025_vm12 = vcmp.ge.s32.totalorder %v209_v28, 1 }
 0x10b   :  { %v158_v34 = vsub.f32 %v156_v33, %v157_v32  ;;  %v1011_v30 = vsel %vm216_vm5, 1.0, %v807_v29  ;;  %v1014_v31 = vsel %vm240_vm6, 1.0, %v807_v29  ;;  %v737_v33 = vsel %vm214_vm7, 1.0, %v807_v29 }
 0x10c   :  { %v287_v32 = vmul.f32 %v1014_v31, %v1011_v30  ;;  %v324_v47 = vmul.f32 %v1011_v30, %v931_v49  ;;  %vm251_vm14 = vcmp.le.s32.totalorder %v207_v27, 14  ;;  %vm252_vm15 = vcmp.le.s32.totalorder %v208_v19, 14 }
 0x10d   :  { %v159_v35 = vadd.f32 1e-05, %v158_v34  ;;  %v1077_v27 = vsel %vm251_vm14, 1.0, %v807_v29  ;;  %vm253_vm1 = vcmp.le.s32.totalorder %v209_v28, 14  ;;  %vm404_vm5 = vcmp.lt.s32.totalorder %v984_v15, 127 }
 0x10e   :  { %vm433_vm6 = vcmp.lt.s32.totalorder %v984_v15, 113  ;;  %vm466_vm7 = vcmp.lt.s32.totalorder %v984_v15, 112 }
 0x10f   :  { %784 = vrsqrt.f32 %v159_v35  ;;  %vm166_vm3 = vweird.f32 %v159_v35 }
 0x115   :  { %v785_v36 = vpop.eup %784 }
 0x116   :  { %v161_v37 = vmul.f32 %v785_v36, %v159_v35  ;;  %vm167_vm2 = vweird.f32 %v785_v36  ;;  %v1030_v35 = vsel %vm238_vm8, 1.0, %v807_v29  ;;  %vm495_vm8 = vcmp.lt.s32.totalorder %v984_v15, 111 }
 0x117   :  { %vm168_vm4 = vmor %vm166_vm3, %vm167_vm2  ;;  %vm375_vm2 = vcmp.lt.s32.totalorder %v984_v15, 1 }
 0x118   :  { %v162_v38 = vmul.f32 %v785_v36, %v161_v37  ;;  %v285_v37 = vmul.f32 %v1030_v35, %v737_v33 }
 0x11a   :  { %v163_v39 = vmul.f32 0.5, %v162_v38 }
 0x11b   :  { %v978_v11 = vpop.permute.xlu0 %410 }
 0x11c   :  { %v164_v40 = vsub.f32 1.5, %v163_v39 }
 0x11e   :  { %v165_v42 = vmul.f32 %v785_v36, %v164_v40 }
 0x120   :  { %v169_v43 = vsel %vm168_vm4, %v785_v36, %v165_v42 }
 0x121   :  { %v174_v44 = vmul.f32 %v169_v43, %v139_v41 }
 0x123   :  { %177 = vperm.xlu1 %780, %v174_v44   ;;  %v1040_v44 = vsel %vm239_vm11, 1.0, %v807_v29 }
 0x124   :  { %v982_v14 = vpop.permute.xlu0 %443 }
 0x12d   :  { %v996_v20 = vpop.permute.xlu0 %472 }
 0x195   :  { %v178_v55 = vpop.permute.xlu1 %177 }
 0x196   :  { %v180_v56 = vmul.f32 %v178_v55, %v170_v52  ;;  %v181_v57 = vmul.f32 %v178_v55, %v171_v53  ;;  %v183_v58 = vmul.f32 %v178_v55, %v173_v54  ;;  %v182_v63 = vmul.f32 %v178_v55, %v172_v59 }
 0x197   :  { %v1053_v52 = vsel %vm1025_vm12, 1.0, %v807_v29  ;;  %vm583_vm12 = vcmask 64512  }
 0x198   :  { %v189_v60 = vadd.f32 %v187_v48, %v180_v56  ;;  %v190_v61 = vadd.f32 %v187_v48, %v181_v57  ;;  %v192_v62 = vadd.f32 %v187_v48, %v183_v58  ;;  %v191_v6 = vadd.f32 %v187_v48, %v182_v63 }
 0x19a   :  { %v193_v0 = vmax.f32 %v189_v60, 0.0  ;;  %v194_v1 = vmax.f32 %v190_v61, 0.0  ;;  %v196_v2 = vmax.f32 %v192_v62, 0.0  ;;  %v195_v7 = vmax.f32 %v191_v6, 0.0 }
 0x19c   :  { %v939_v3 = vmin.f32 %v193_v0, 6.0  ;;  %v941_v4 = vmin.f32 %v194_v1, 6.0  ;;  %v943_v5 = vmin.f32 %v196_v2, 6.0  ;;  %v948_v9 = vmin.f32 %v195_v7, 6.0 }
 0x19d   :  { %v322_v0 = vmul.f32 %v737_v33, %v931_v49  ;;  %v1061_v1 = vsel %vm250_vm13, 1.0, %v807_v29 }
 0x19e   :  { %278 = vrot.lane.b32.xlu1 %v943_v5, %s799_s4  ;;  %274 = vrot.lane.b32.xlu0 %v941_v4, %s799_s4 }
 0x19f   :  { %272 = vrot.lane.b32.xlu2 %v939_v3, %s799_s4 }
 0x1a6   :  { %305 = vrot.lane.b32.xlu1 %v939_v3, %s800_s25  ;;  %311 = vrot.lane.b32.xlu0 %v943_v5, %s800_s25 }
 0x1a7   :  { %276 = vrot.lane.b32.xlu2 %v948_v9, %s799_s4 }
 0x1ae   :  { %336 = vrot.lane.b32.xlu1 %v941_v4, %s801_s26  ;;  %334 = vrot.lane.b32.xlu0 %v939_v3, %s801_s26 }
 0x1af   :  { %307 = vrot.lane.b32.xlu2 %v941_v4, %s800_s25 }
 0x1b6   :  { %338 = vrot.lane.b32.xlu1 %v948_v9, %s801_s26  ;;  %505 = vperm.xlu0 %781, %v885_v8   ;;  %v291_v8 = vpop.permute.xlu2 %290 }
 0x1b7   :  { %309 = vrot.lane.b32.xlu2 %v948_v9, %s800_s25  ;;  %v295_v41 = vmul.f32 %v291_v8, %v287_v32  ;;  %v294_v53 = vmul.f32 %v1040_v44, %v291_v8  ;;  %v293_v54 = vmul.f32 %v291_v8, %v285_v37  ;;  %v296_v55 = vmul.f32 %v1053_v52, %v291_v8 }
 0x1b8   :  { %v347_v32 = vmul.f32 %v1061_v1, %v737_v33 }
 0x1ba   :  { %v355_v37 = vmul.f32 %v933_v50, %v347_v32 }
 0x1be   :  { %369 = vrot.lane.b32.xlu1 %v941_v4, %s802_s27  ;;  %493 = vrot.lane.b32.xlu0 %v943_v5, %s803_s28  ;;  %v976_v10 = vpop.permute.xlu2 %265 }
 0x1bf   :  { %340 = vrot.lane.b32.xlu2 %v943_v5, %s801_s26  ;;  %782 = vset.pattern.permute.xlu0 %v791_v24  ;;  %v270_v46 = vmul.f32 %v976_v10, %v948_v9  ;;  %v269_v62 = vmul.f32 %v976_v10, %v941_v4  ;;  %v268_v2 = vmul.f32 %v976_v10, %v939_v3 }
 0x1c0   :  { %v271_v6 = vmul.f32 %v976_v10, %v943_v5 }
 0x1c6   :  { %371 = vrot.lane.b32.xlu1 %v948_v9, %s802_s27 }
 0x1c7   :  { %367 = vrot.lane.b32.xlu2 %v939_v3, %s802_s27 }
 0x1ce   :  { %398 = vrot.lane.b32.xlu1 %v941_v4, %s804_s29 }
 0x1cf   :  { %373 = vrot.lane.b32.xlu2 %v943_v5, %s802_s27 }
 0x1d6   :  { %402 = vrot.lane.b32.xlu1 %v943_v5, %s804_s29 }
 0x1d7   :  { %396 = vrot.lane.b32.xlu2 %v939_v3, %s804_s29 }
 0x1de   :  { %427 = vrot.lane.b32.xlu1 %v941_v4, %s805_s30 }
 0x1df   :  { %400 = vrot.lane.b32.xlu2 %v948_v9, %s804_s29 }
 0x1e6   :  { %431 = vrot.lane.b32.xlu1 %v943_v5, %s805_s30 }
 0x1e7   :  { %425 = vrot.lane.b32.xlu2 %v939_v3, %s805_s30 }
 0x1ee   :  { %460 = vrot.lane.b32.xlu1 %v941_v4, %s806_s11 }
 0x1ef   :  { %429 = vrot.lane.b32.xlu2 %v948_v9, %s805_s30 }
 0x1f6   :  { %464 = vrot.lane.b32.xlu1 %v943_v5, %s806_s11 }
 0x1f7   :  { %458 = vrot.lane.b32.xlu2 %v939_v3, %s806_s11 }
 0x1f9   :  { %v273_v12 = vpop.permute.xlu2 %272 }
 0x1fe   :  { %489 = vrot.lane.b32.xlu1 %v941_v4, %s803_s28 }
 0x1ff   :  { %462 = vrot.lane.b32.xlu2 %v948_v9, %s806_s11 }
 0x201   :  { %v277_v16 = vpop.permute.xlu2 %276 }
 0x207   :  { %487 = vrot.lane.b32.xlu2 %v939_v3, %s803_s28 }
 0x209   :  { %v308_v24 = vpop.permute.xlu2 %307 }
 0x20f   :  { %491 = vrot.lane.b32.xlu2 %v948_v9, %s803_s28 }
 0x210   :  { %v279_v36 = vpop.permute.xlu1 %278  ;;  %v275_v42 = vpop.permute.xlu0 %274 }
 0x211   :  { %v281_v38 = vsel %vm280_vm9, %v277_v16, %v279_v36  ;;  %v284_v39 = vsel %vm280_vm9, %v279_v36, %v273_v12  ;;  %v310_v40 = vpop.permute.xlu2 %309  ;;  %v282_v45 = vsel %vm280_vm9, %v275_v42, %v277_v16  ;;  %v283_v48 = vsel %vm280_vm9, %v273_v12, %v275_v42 }
 0x212   :  { %v315_v43 = vsel %vm313_vm10, %v308_v24, %v310_v40  ;;  %v299_v51 = vmul.f32 %v295_v41, %v282_v45  ;;  %v298_v58 = vmul.f32 %v294_v53, %v283_v48  ;;  %v297_v59 = vmul.f32 %v293_v54, %v284_v39 }
 0x213   :  { %v328_v56 = vmul.f32 %v324_v47, %v315_v43  ;;  %v300_v60 = vmul.f32 %v296_v55, %v281_v38  ;;  %v1086_v39 = vsel %vm252_vm15, 1.0, %v807_v29  ;;  %v1097_v45 = vsel %vm253_vm1, 1.0, %v807_v29 }
 0x214   :  { %v303_v57 = vadd.f32 %v299_v51, %v270_v46  ;;  %v302_v12 = vadd.f32 %v298_v58, %v269_v62  ;;  %v301_v18 = vadd.f32 %v297_v59, %v268_v2  ;;  %v349_v41 = vmul.f32 %v1086_v39, %v1011_v30 }
 0x215   :  { %v304_v3 = vadd.f32 %v300_v60, %v271_v6  ;;  %v358_v47 = vmul.f32 %v1097_v45, %v933_v50  ;;  %v384_v30 = vmul.f32 %v1030_v35, %v919_v26  ;;  %v385_v60 = vmul.f32 %v1040_v44, %v919_v26 }
 0x216   :  { %v332_v61 = vadd.f32 %v328_v56, %v303_v57  ;;  %v357_v46 = vmul.f32 %v933_v50, %v349_v41  ;;  %v448_v41 = vmul.f32 %v1014_v31, %v982_v14 }
 0x218   :  { %v306_v63 = vpop.permute.xlu1 %305  ;;  %v312_v8 = vpop.permute.xlu0 %311 }
 0x219   :  { %v316_v7 = vsel %vm313_vm10, %v306_v63, %v308_v24  ;;  %v341_v9 = vpop.permute.xlu2 %340  ;;  %v314_v13 = vsel %vm313_vm10, %v310_v40, %v312_v8  ;;  %v317_v16 = vsel %vm313_vm10, %v312_v8, %v306_v63 }
 0x21a   :  { %v327_v4 = vmul.f32 %v931_v49, %v316_v7  ;;  %v326_v23 = vmul.f32 %v322_v0, %v317_v16  ;;  %v329_v5 = vmul.f32 %v931_v49, %v314_v13  ;;  %v356_v49 = vmul.f32 %v1077_v27, %v933_v50 }
 0x21c   :  { %v331_v10 = vadd.f32 %v327_v4, %v302_v12  ;;  %v330_v25 = vadd.f32 %v326_v23, %v301_v18  ;;  %v333_v24 = vadd.f32 %v329_v5, %v304_v3  ;;  %v211_v18 = vand.u32 255, %v999_v21 }
 0x21d   :  { %v213_v3 = vand.u32 255, %v1002_v22  ;;  %v387_v21 = vmul.f32 %v1053_v52, %v919_v26 }
 0x21e   :  { %vm227_vm3 = vcmp.lt.s32.totalorder %v211_v18, 240 }
 0x21f   :  { %vm229_vm4 = vcmp.lt.s32.totalorder %v213_v3, 240 }
 0x220   :  { %v337_v34 = vpop.permute.xlu1 %336  ;;  %v335_v38 = vpop.permute.xlu0 %334 }
 0x221   :  { %v368_v36 = vpop.permute.xlu2 %367  ;;  %v345_v33 = vsel %vm342_vm0, %v335_v38, %v337_v34  ;;  %v346_v17 = vsel %vm342_vm0, %v341_v9, %v335_v38 }
 0x222   :  { %v359_v19 = vmul.f32 %v355_v37, %v346_v17  ;;  %v360_v40 = vmul.f32 %v356_v49, %v345_v33  ;;  %v413_v33 = vmul.f32 %v1061_v1, %v978_v11  ;;  %v414_v17 = vmul.f32 %v1077_v27, %v978_v11 }
 0x224   :  { %v363_v42 = vadd.f32 %v359_v19, %v330_v25  ;;  %v364_v43 = vadd.f32 %v360_v40, %v331_v10  ;;  %v739_v10 = vsel %vm227_vm3, 1.0, %v807_v29  ;;  %v740_v25 = vsel %vm229_vm4, 1.0, %v807_v29 }
 0x225   :  { %v439_v22 = vmul.f32 %v1040_v44, %v739_v10  ;;  %v416_v44 = vmul.f32 %v1097_v45, %v978_v11  ;;  %v446_v19 = vmul.f32 %v1030_v35, %v982_v14 }
 0x227   :  { %v447_v40 = vmul.f32 %v982_v14, %v439_v22 }
 0x228   :  { %v339_v48 = vpop.permute.xlu1 %338 }
 0x229   :  { %v343_v28 = vsel %vm342_vm0, %v339_v48, %v341_v9  ;;  %v344_v51 = vsel %vm342_vm0, %v337_v34, %v339_v48  ;;  %v374_v53 = vpop.permute.xlu2 %373  ;;  %v386_v34 = vmul.f32 %v1014_v31, %v919_v26  ;;  %v415_v26 = vmul.f32 %v1086_v39, %v978_v11 }
 0x22a   :  { %v361_v54 = vmul.f32 %v357_v46, %v344_v51  ;;  %v362_v55 = vmul.f32 %v358_v47, %v343_v28  ;;  %v379_v56 = vsel %vm375_vm2, %v374_v53, %v368_v36  ;;  %v476_v11 = vmul.f32 %v739_v10, %v996_v20 }
 0x22b   :  { %v388_v57 = vmul.f32 %v384_v30, %v379_v56  ;;  %v478_v28 = vmul.f32 %v740_v25, %v996_v20  ;;  %v503_v51 = vmul.f32 %v1097_v45, %v740_v25 }
 0x22c   :  { %v365_v58 = vadd.f32 %v361_v54, %v332_v61  ;;  %v366_v59 = vadd.f32 %v362_v55, %v333_v24 }
 0x22d   :  { %v1111_v50 = vadd.f32 %v388_v57, %v363_v42 }
 0x230   :  { %v370_v62 = vpop.permute.xlu1 %369 }
 0x231   :  { %v378_v63 = vsel %vm375_vm2, %v368_v36, %v370_v62  ;;  %v397_v0 = vpop.permute.xlu2 %396  ;;  %v441_v36 = vmul.f32 %v1053_v52, %v740_v25  ;;  %v506_v52 = vpop.permute.xlu0 %505 }
 0x232   :  { %v389_v2 = vmul.f32 %v385_v60, %v378_v63 }
 0x233   :  { %v449_v42 = vmul.f32 %v982_v14, %v441_v36 }
 0x234   :  { %v1117_v6 = vadd.f32 %v389_v2, %v364_v43 }
 0x238   :  { %v372_v7 = vpop.permute.xlu1 %371 }
 0x239   :  { %v401_v9 = vpop.permute.xlu2 %400  ;;  %v376_v24 = vsel %vm375_vm2, %v372_v7, %v374_v53  ;;  %v377_v32 = vsel %vm375_vm2, %v370_v62, %v372_v7  ;;  %v511_v7 = vmul.f32 %v506_v52, %v503_v51  ;;  %v494_v25 = vpop.permute.xlu0 %493 }
 0x23a   :  { %v390_v49 = vmul.f32 %v386_v34, %v377_v32  ;;  %v391_v38 = vmul.f32 %v387_v21, %v376_v24 }
 0x23c   :  { %v394_v47 = vadd.f32 %v390_v49, %v365_v58  ;;  %v395_v48 = vadd.f32 %v391_v38, %v366_v59 }
 0x240   :  { %v399_v8 = vpop.permute.xlu1 %398 }
 0x241   :  { %v426_v12 = vpop.permute.xlu2 %425  ;;  %v407_v43 = vsel %vm404_vm5, %v397_v0, %v399_v8  ;;  %v406_v35 = vsel %vm404_vm5, %v399_v8, %v401_v9 }
 0x242   :  { %v417_v30 = vmul.f32 %v413_v33, %v407_v43  ;;  %v418_v57 = vmul.f32 %v414_v17, %v406_v35 }
 0x244   :  { %v421_v18 = vadd.f32 %v417_v30, %v1111_v50  ;;  %v422_v3 = vadd.f32 %v418_v57, %v1117_v6 }
 0x248   :  { %v403_v4 = vpop.permute.xlu1 %402 }
 0x249   :  { %v430_v61 = vpop.permute.xlu2 %429  ;;  %v405_v46 = vsel %vm404_vm5, %v401_v9, %v403_v4  ;;  %v408_v14 = vsel %vm404_vm5, %v403_v4, %v397_v0 }
 0x24a   :  { %v419_v53 = vmul.f32 %v415_v26, %v405_v46  ;;  %v420_v60 = vmul.f32 %v416_v44, %v408_v14 }
 0x24c   :  { %v423_v8 = vadd.f32 %v419_v53, %v394_v47  ;;  %v424_v24 = vadd.f32 %v420_v60, %v395_v48 }
 0x250   :  { %v428_v13 = vpop.permute.xlu1 %427 }
 0x251   :  { %v459_v16 = vpop.permute.xlu2 %458  ;;  %v435_v54 = vsel %vm433_vm6, %v428_v13, %v430_v61  ;;  %v436_v55 = vsel %vm433_vm6, %v426_v12, %v428_v13  ;;  %v501_v13 = vmul.f32 %v1077_v27, %v739_v10  ;;  %v508_v27 = vmul.f32 %v1061_v1, %v506_v52 }
 0x252   :  { %v450_v0 = vmul.f32 %v446_v19, %v436_v55  ;;  %v451_v2 = vmul.f32 %v447_v40, %v435_v54 }
 0x254   :  { %v454_v21 = vadd.f32 %v450_v0, %v421_v18  ;;  %v455_v22 = vadd.f32 %v451_v2, %v422_v3 }
 0x258   :  { %v432_v23 = vpop.permute.xlu1 %431 }
 0x259   :  { %v463_v5 = vpop.permute.xlu2 %462  ;;  %v434_v31 = vsel %vm433_vm6, %v430_v61, %v432_v23  ;;  %v437_v58 = vsel %vm433_vm6, %v432_v23, %v426_v12 }
 0x25a   :  { %v452_v45 = vmul.f32 %v448_v41, %v434_v31  ;;  %v453_v12 = vmul.f32 %v449_v42, %v437_v58 }
 0x25c   :  { %v456_v32 = vadd.f32 %v452_v45, %v423_v8  ;;  %v457_v10 = vadd.f32 %v453_v12, %v424_v24 }
 0x260   :  { %v461_v37 = vpop.permute.xlu1 %460 }
 0x261   :  { %v1134_v29 = vpop.permute.xlu2 %487  ;;  %v468_v62 = vsel %vm466_vm7, %v461_v37, %v463_v5  ;;  %v469_v63 = vsel %vm466_vm7, %v459_v16, %v461_v37  ;;  %v509_v37 = vmul.f32 %v506_v52, %v501_v13 }
 0x262   :  { %v479_v23 = vmul.f32 %v996_v20, %v469_v63  ;;  %v499_v50 = vsel %vm495_vm8, %v494_v25, %v1134_v29 }
 0x263   :  { %v515_v19 = vmul.f32 %v511_v7, %v499_v50  ;;  %v521_v7 = vld [vmem:[%s1230_s7] sm:$0xff] }
 0x264   :  { %v483_v49 = vadd.f32 %v479_v23, %v454_v21 }
 0x268   :  { %v465_v56 = vpop.permute.xlu1 %464 }
 0x269   :  { %v467_v59 = vsel %vm466_vm7, %v463_v5, %v465_v56  ;;  %v470_v9 = vsel %vm466_vm7, %v465_v56, %v459_v16  ;;  %v492_v61 = vpop.permute.xlu2 %491  ;;  %v480_v5 = vmul.f32 %v476_v11, %v468_v62  ;;  %v510_v16 = vmul.f32 %v1086_v39, %v506_v52  ;;  %v520_v62 = vld [vmem:[%s1229_s6] sm:$0xff] }
 0x26a   :  { %v481_v4 = vmul.f32 %v996_v20, %v467_v59  ;;  %v482_v34 = vmul.f32 %v478_v28, %v470_v9  ;;  %v496_v36 = vsel %vm495_vm8, %v492_v61, %v494_v25 }
 0x26b   :  { %v484_v38 = vadd.f32 %v480_v5, %v455_v22  ;;  %v514_v26 = vmul.f32 %v510_v16, %v496_v36 }
 0x26c   :  { %v485_v20 = vadd.f32 %v481_v4, %v456_v32  ;;  %v486_v17 = vadd.f32 %v482_v34, %v457_v10 }
 0x26e   :  { %v518_v40 = vadd.f32 %v514_v26, %v485_v20  ;;  %v519_v43 = vadd.f32 %v515_v19, %v486_v17 }
 0x270   :  { %v490_v6 = vpop.permute.xlu1 %489  ;;  %v529_v48 = vmul.f32 %v518_v40, %v518_v40  ;;  %v530_v14 = vmul.f32 %v519_v43, %v519_v43 }
 0x271   :  { %v497_v39 = vsel %vm495_vm8, %v490_v6, %v492_v61  ;;  %v498_v33 = vsel %vm495_vm8, %v1134_v29, %v490_v6  ;;  %v582_v6 = vld [vmem:[%s1231_s2] sm:$0xff] }
 0x272   :  { %v512_v1 = vmul.f32 %v508_v27, %v498_v33  ;;  %v513_v44 = vmul.f32 %v509_v37, %v497_v39 }
 0x274   :  { %v516_v41 = vadd.f32 %v512_v1, %v483_v49  ;;  %v517_v42 = vadd.f32 %v513_v44, %v484_v38 }
 0x276   :  { %v522_v46 = vadd.f32 %v517_v42, %v516_v41  ;;  %v527_v52 = vmul.f32 %v516_v41, %v516_v41  ;;  %v528_v11 = vmul.f32 %v517_v42, %v517_v42 }
 0x278   :  { %v523_v47 = vadd.f32 %v522_v46, %v518_v40  ;;  %v531_v35 = vadd.f32 %v528_v11, %v527_v52  ;;  %v668_v46 = vld [vmem:[%s1232_s9] sm:$0xff] }
 0x27a   :  { %v524_v28 = vadd.f32 %v523_v47, %v519_v43  ;;  %v532_v31 = vadd.f32 %v531_v35, %v529_v48 }
 0x27c   :  { %525 = vadd.xlane.f32.xlu1 %v524_v28  ;;  %v533_v15 = vadd.f32 %v532_v31, %v530_v14 }
 0x27e   :  { %534 = vadd.xlane.f32.xlu2 %v533_v15 }
 0x2ef   :  { %v526_v29 = vpop.xlane.xlu1 %525 }
 0x2f0   :  { %v536_v51 = vmul.f32 0.001953125, %v526_v29 }
 0x2f1   :  { %v535_v30 = vpop.xlane.xlu2 %534 }
 0x2f2   :  { %v537_v53 = vmul.f32 0.001953125, %v535_v30  ;;  %v538_v54 = vmul.f32 %v536_v51, %v536_v51  ;;  %v551_v8 = vsub.f32 %v516_v41, %v536_v51  ;;  %v552_v12 = vsub.f32 %v517_v42, %v536_v51 }
 0x2f3   :  { %v553_v4 = vsub.f32 %v518_v40, %v536_v51  ;;  %v554_v61 = vsub.f32 %v519_v43, %v536_v51 }
 0x2f4   :  { %v539_v55 = vsub.f32 %v537_v53, %v538_v54  ;;  %v667_v53 = vld [vmem:[%s1233_s8] sm:$0xff] }
 0x2f6   :  { %v540_v56 = vadd.f32 1e-05, %v539_v55 }
 0x2f8   :  { %786 = vrsqrt.f32 %v540_v56  ;;  %vm547_vm10 = vweird.f32 %v540_v56 }
 0x2fe   :  { %v787_v57 = vpop.eup %786 }
 0x2ff   :  { %v542_v58 = vmul.f32 %v787_v57, %v540_v56  ;;  %vm548_vm9 = vweird.f32 %v787_v57 }
 0x300   :  { %vm549_vm11 = vmor %vm547_vm10, %vm548_vm9 }
 0x301   :  { %v543_v59 = vmul.f32 %v787_v57, %v542_v58 }
 0x303   :  { %v544_v60 = vmul.f32 0.5, %v543_v59 }
 0x305   :  { %v545_v45 = vsub.f32 1.5, %v544_v60 }
 0x307   :  { %v546_v63 = vmul.f32 %v787_v57, %v545_v45 }
 0x309   :  { %v550_v0 = vsel %vm549_vm11, %v787_v57, %v546_v63 }
 0x30a   :  { %v555_v2 = vmul.f32 %v550_v0, %v520_v62 }
 0x30c   :  { %558 = vperm.xlu0 %782, %v555_v2  }
 0x314   :  { %567 = vperm.xlu0 %782, %v521_v7  }
 0x37e   :  { %v559_v9 = vpop.permute.xlu0 %558 }
 0x37f   :  { %v561_v13 = vmul.f32 %v559_v9, %v551_v8  ;;  %v562_v18 = vmul.f32 %v559_v9, %v552_v12  ;;  %v563_v3 = vmul.f32 %v559_v9, %v553_v4  ;;  %v564_v23 = vmul.f32 %v559_v9, %v554_v61 }
 0x386   :  { %v568_v5 = vpop.permute.xlu0 %567 }
 0x387   :  { %v570_v25 = vadd.f32 %v568_v5, %v561_v13  ;;  %v571_v24 = vadd.f32 %v568_v5, %v562_v18  ;;  %v572_v32 = vadd.f32 %v568_v5, %v563_v3  ;;  %v573_v34 = vadd.f32 %v568_v5, %v564_v23 }
 0x389   :  { %v574_v16 = vmax.f32 %v570_v25, 0.0  ;;  %v575_v21 = vmax.f32 %v571_v24, 0.0  ;;  %v576_v22 = vmax.f32 %v572_v32, 0.0  ;;  %v577_v36 = vmax.f32 %v573_v34, 0.0 }
 0x38b   :  { %v578_v27 = vmin.f32 %v574_v16, 6.0  ;;  %v579_v10 = vmin.f32 %v575_v21, 6.0  ;;  %v580_v50 = vmin.f32 %v576_v22, 6.0  ;;  %v581_v20 = vmin.f32 %v577_v36, 6.0 }
 0x38d   :  { %602 = vmatpush.msrb.mxu0 %v578_v27  ;;  %622 = vmatpush.msrb.mxu1 %v579_v10 }
 0x38e   :  { %642 = vmatpush.msrb.mxu2 %v580_v50  ;;  %662 = vmatpush.msrb.mxu3 %v581_v20 }
 0x38f   :  { %751 = vmatmul.msk.f32.vlgmr.msrb.gmra.mxu2 %vm583_vm12, %v582_v6  ;;  %752 = vmatmul.msk.f32.vlgmr.msrb.gmra.mxu3 %vm583_vm12, %v582_v6 }
 0x390   :  { %749 = vmatmul.msk.f32.vlgmr.msrb.gmra.mxu0 %vm583_vm12, %v582_v6  ;;  %750 = vmatmul.msk.f32.vlgmr.msrb.gmra.mxu1 %vm583_vm12, %v582_v6 }
 0x40d   :  { %v604_v37 = vpop.f32.mrf.mxu0  ;;  %v624_v49 = vpop.f32.mrf.mxu1 }
 0x40e   :  { %v674_v38 = vmul.f32 %v604_v37, %v604_v37  ;;  %v675_v39 = vmul.f32 %v624_v49, %v624_v49  ;;  %v669_v33 = vadd.f32 %v624_v49, %v604_v37 }
 0x410   :  { %v678_v17 = vadd.f32 %v675_v39, %v674_v38 }
 0x412   :  { %v644_v26 = vpop.f32.mrf.mxu2  ;;  %v664_v1 = vpop.f32.mrf.mxu3 }
 0x413   :  { %v670_v44 = vadd.f32 %v669_v33, %v644_v26  ;;  %v676_v19 = vmul.f32 %v644_v26, %v644_v26  ;;  %v677_v40 = vmul.f32 %v664_v1, %v664_v1 }
 0x415   :  { %v671_v41 = vadd.f32 %v670_v44, %v664_v1  ;;  %v679_v42 = vadd.f32 %v678_v17, %v676_v19 }
 0x417   :  { %672 = vadd.xlane.f32.xlu0 %v671_v41  ;;  %v680_v43 = vadd.f32 %v679_v42, %v677_v40 }
 0x419   :  { %681 = vadd.xlane.f32.xlu2 %v680_v43 }
 0x431   :  { %714 = vperm.xlu2 %783, %v668_v46  }
 0x48a   :  { %v673_v52 = vpop.xlane.xlu0 %672 }
 0x48b   :  { %v683_v11 = vmul.f32 0.001953125, %v673_v52 }
 0x48c   :  { %v682_v47 = vpop.xlane.xlu2 %681 }
 0x48d   :  { %v684_v48 = vmul.f32 0.001953125, %v682_v47  ;;  %v685_v35 = vmul.f32 %v683_v11, %v683_v11  ;;  %v698_v57 = vsub.f32 %v604_v37, %v683_v11  ;;  %v699_v58 = vsub.f32 %v624_v49, %v683_v11 }
 0x48e   :  { %v700_v59 = vsub.f32 %v644_v26, %v683_v11  ;;  %v701_v60 = vsub.f32 %v664_v1, %v683_v11 }
 0x48f   :  { %v686_v28 = vsub.f32 %v684_v48, %v685_v35 }
 0x491   :  { %v687_v14 = vadd.f32 1e-05, %v686_v28 }
 0x493   :  { %788 = vrsqrt.f32 %v687_v14  ;;  %vm694_vm14 = vweird.f32 %v687_v14 }
 0x494   :  { %v715_v62 = vpop.permute.xlu2 %714 }
 0x499   :  { %v789_v31 = vpop.eup %788 }
 0x49a   :  { %v689_v15 = vmul.f32 %v789_v31, %v687_v14  ;;  %vm695_vm13 = vweird.f32 %v789_v31 }
 0x49b   :  { %vm696_vm15 = vmor %vm694_vm14, %vm695_vm13 }
 0x49c   :  { %v690_v29 = vmul.f32 %v789_v31, %v689_v15 }
 0x49e   :  { %v691_v51 = vmul.f32 0.5, %v690_v29 }
 0x4a0   :  { %v692_v30 = vsub.f32 1.5, %v691_v51 }
 0x4a2   :  { %v693_v54 = vmul.f32 %v789_v31, %v692_v30 }
 0x4a4   :  { %v697_v55 = vsel %vm696_vm15, %v789_v31, %v693_v54 }
 0x4a5   :  { %v702_v56 = vmul.f32 %v697_v55, %v667_v53 }
 0x4a7   :  { %705 = vperm.xlu1 %780, %v702_v56  }
 0x519   :  { %v706_v45 = vpop.permute.xlu1 %705 }
 0x51a   :  { %v708_v63 = vmul.f32 %v706_v45, %v698_v57  ;;  %v709_v0 = vmul.f32 %v706_v45, %v699_v58  ;;  %v710_v2 = vmul.f32 %v706_v45, %v700_v59  ;;  %v711_v7 = vmul.f32 %v706_v45, %v701_v60 }
 0x51c   :  { %v717_v9 = vadd.f32 %v715_v62, %v708_v63  ;;  %v718_v8 = vadd.f32 %v715_v62, %v709_v0  ;;  %v719_v12 = vadd.f32 %v715_v62, %v710_v2  ;;  %v720_v4 = vadd.f32 %v715_v62, %v711_v7 }
 0x51e   :  { %721 = vst [vmem:[%s1234_s10] sm:$0xff] %v717_v9 }
 0x51f   :  { %722 = vst [vmem:[%s1234_s10 + $0x8] sm:$0xff] %v718_v8 }
 0x520   :  { %723 = vst [vmem:[%s1234_s10 + $0x10] sm:$0xff] %v719_v12 }
 0x521   :  { %724 = vst [vmem:[%s1234_s10 + $0x18] sm:$0xff] %v720_v4 }

</bundles_post_ra>
